<compile_context>
chip_gen: v7x
topology: tpu7x:2x2x1
jax: 0.10.0
libtpu: 0.0.40
codegen_flags: <defaults>
</compile_context>

<pallas_src>
import jax
import jax.numpy as jnp
from jax.experimental import pallas as pl
from jax.experimental.pallas import tpu as pltpu

# ----------------------------- hyperparameters ------------------------------
B = 2                      # batch
VOCAB = 100                # word vocab (synthetic create_embedding_layer)
EMB_DIM = 32               # word embedding dim
MAX_LEN_USER = 16          # max_length_user_rep
MAX_LEN_SEC = 16           # max_length_comment_section
NV_VOCAB = 50              # node2vec vocab (synthetic)
NV_DIM = 8                 # node2vec_embedding_dim
NUM_KERNELS = 50           # user_num_kernels == section_num_kernels
KSIZE = 5                  # user_kernel_size == section_kernel_size
LF_DEEPCONN = 16           # latent_factors_deepconn
LF_USER = 10               # latent_factors_user
LF_SEC = 10                # latent_factors_section
N_FM = LF_USER + LF_SEC    # FM(n=20, k=20)

C_PAD = 128                                    # lane-dense channel padding
P_USER = MAX_LEN_USER - KSIZE + 1              # 12 conv output positions
P_SEC = MAX_LEN_SEC - KSIZE + 1                # 12
P_PAD = ((max(P_USER, P_SEC) + 7) // 8) * 8    # 16 (sublane aligned)
KD = KSIZE * EMB_DIM                           # 160 im2col contraction dim
LANE = 128                                     # lane-dense output width


# --------------------------------- kernel -----------------------------------
def forward_kernel(
    u_unf_ref, unode_ref,                 # user im2col [B*P_PAD, KD] bf16, node2vec [B,NV]
    s_unf_ref, snode_ref,                 # stacked pos|neg section [2B*P_PAD, KD], [2B,NV]
    wu_conv_ref, bu_conv_ref,             # [KD, C_PAD] bf16, [1, C_PAD] f32
    ws_conv_ref, bs_conv_ref,             # [KD, C_PAD] bf16, [1, C_PAD] f32
    w_ul_ref, b_ul_ref,                   # [C_PAD, 16], [1, 16]
    w_ulc_h_ref, w_ulc_n_ref, b_ulc_ref,  # [16, 10], [NV, 10], [1, 10]
    w_sl_ref, b_sl_ref,                   # [C_PAD, 16], [1, 16]
    w_slc_h_ref, w_slc_n_ref, b_slc_ref,  # [16, 10], [NV, 10], [1, 10]
    fm_v_u_ref, fm_v_s_ref,               # [10, 20], [10, 20]
    fm_w_u_ref, fm_w_s_ref,               # [10, 1], [10, 1]
    fm_b_ref, w_out_ref, b_out_ref,       # SMEM (1,1) scalars
    out_ref,                              # [B, LANE] f32 (lane-dense)
):
    def branch(x_unf, node, w_conv, b_conv, w_lin, b_lin,
               w_con_h, w_con_n, b_con, p_valid):
        # One im2col matmul on the MXU (bf16 operands, f32 accumulate).
        nb = x_unf.shape[0] // P_PAD
        acc = jnp.dot(x_unf, w_conv, preferred_element_type=jnp.float32)
        acc = jnp.maximum(acc + b_conv, 0.0)                 # conv bias + ReLU
        acc = acc.reshape(nb, P_PAD, C_PAD)
        # Mask padded positions (exact: post-ReLU values are >= 0, pad -> 0).
        pos = jax.lax.broadcasted_iota(jnp.int32, (nb, P_PAD, 1), 1)
        acc = jnp.where(pos < p_valid, acc, 0.0)
        pooled = jnp.max(acc, axis=1)                        # max_pool1d -> [nb, C_PAD]
        h = jnp.maximum(
            jnp.dot(pooled, w_lin, preferred_element_type=jnp.float32) + b_lin,
            0.0)
        # user/section_linear_con without the lane-axis concat:
        hc = (jnp.dot(h, w_con_h, preferred_element_type=jnp.float32)
              + jnp.dot(node, w_con_n, preferred_element_type=jnp.float32)
              + b_con)
        return jnp.maximum(hc, 0.0)

    # User branch: computed once, shared by pos and neg predictions.
    u = branch(u_unf_ref[...], unode_ref[...],
               wu_conv_ref[...], bu_conv_ref[...],
               w_ul_ref[...], b_ul_ref[...],
               w_ulc_h_ref[...], w_ulc_n_ref[...], b_ulc_ref[...],
               P_USER)                                       # [B, LF_USER]

    # Section branch: pos and neg stacked -> one pass, M doubled for the MXU.
    s_all = branch(s_unf_ref[...], snode_ref[...],
                   ws_conv_ref[...], bs_conv_ref[...],
                   w_sl_ref[...], b_sl_ref[...],
                   w_slc_h_ref[...], w_slc_n_ref[...], b_slc_ref[...],
                   P_SEC)                                    # [2B, LF_SEC]

    nb = u.shape[0]
    fm_b = fm_b_ref[0, 0]
    w_out = w_out_ref[0, 0]
    b_out = b_out_ref[0, 0]

    # TODO(synk): FM class not provided in source; standard 2nd-order FM assumed:
    #   y = b + z @ w + 0.5 * sum((zV)^2 - (z^2)(V^2), axis=1, keepdims=True)
    # with z = [u, s] realized via split matmuls (no concat). User terms reused.
    v_u = fm_v_u_ref[...]
    v_s = fm_v_s_ref[...]
    zv_u = jnp.dot(u, v_u, preferred_element_type=jnp.float32)            # [B, N_FM]
    z2v2_u = jnp.dot(u * u, v_u * v_u, preferred_element_type=jnp.float32)
    lin_u = jnp.dot(u, fm_w_u_ref[...], preferred_element_type=jnp.float32)

    zv_s = jnp.dot(s_all, v_s, preferred_element_type=jnp.float32)        # [2B, N_FM]
    z2v2_s = jnp.dot(s_all * s_all, v_s * v_s, preferred_element_type=jnp.float32)
    lin_s = jnp.dot(s_all, fm_w_s_ref[...], preferred_element_type=jnp.float32)

    def head(zv_si, z2v2_si, lin_si):
        zv = zv_u + zv_si
        z2v2 = z2v2_u + z2v2_si
        pair = 0.5 * jnp.sum(zv * zv - z2v2, axis=1, keepdims=True)
        f = lin_u + lin_si + fm_b + pair                     # FM output [B, 1]
        return f * w_out + b_out                             # out_layer Linear(1,1)

    out_pos = head(zv_s[:nb], z2v2_s[:nb], lin_s[:nb])
    out_neg = head(zv_s[nb:], z2v2_s[nb:], lin_s[nb:])
    res = jax.nn.sigmoid(out_pos - out_neg)                  # [B, 1]
    out_ref[...] = jnp.broadcast_to(res, out_ref.shape)      # lane-dense store


# ---------------------------------- glue -------------------------------------
def embedding_bag_mean(table, indices, offsets, batch_size):
    # nn.EmbeddingBag (default mode='mean') with 1-D indices + offsets.
    n = indices.shape[0]
    seg = jnp.searchsorted(offsets, jnp.arange(n), side="right") - 1
    emb = table[indices]
    sums = jax.ops.segment_sum(emb, seg, num_segments=batch_size)
    counts = jax.ops.segment_sum(jnp.ones((n,), jnp.float32), seg,
                                 num_segments=batch_size)
    return sums / jnp.maximum(counts, 1.0)[:, None]


def im2col_content(emb_table, content, p_valid):
    # Unfold [B, L] token ids into im2col activations [B*P_PAD, K*D] (bf16),
    # padded with zero rows for positions p_valid..P_PAD-1 (masked in-kernel).
    b, _ = content.shape
    d = emb_table.shape[1]
    win = jnp.arange(p_valid)[:, None] + jnp.arange(KSIZE)[None, :]   # [P, K]
    idx = content[:, win]                                             # [B, P, K]
    x = emb_table[idx].astype(jnp.float32)                            # [B, P, K, D]
    x = x.reshape(b, p_valid, KSIZE * d)
    x = jnp.pad(x, ((0, 0), (0, P_PAD - p_valid), (0, 0)))
    return x.reshape(b * P_PAD, KSIZE * d).astype(jnp.bfloat16)


def _forward(params, emb_table, nv_table,
             user_content, user_emb, user_emb_offsets,
             pos_section, neg_section):
    batch = user_content.shape[0]

    # TODO(synk): embedding gather / EmbeddingBag mean could be fused in-kernel
    # via PrefetchScalarGridSpec (indices in SMEM, tables resident in VMEM);
    # kept in the JAX wrapper here.
    u_unf = im2col_content(emb_table, user_content, P_USER)
    unode = embedding_bag_mean(nv_table, user_emb, user_emb_offsets, batch)

    sc_p, se_p, so_p = pos_section
    sc_n, se_n, so_n = neg_section
    s_content = jnp.concatenate([sc_p, sc_n], axis=0)                 # [2B, L]
    s_unf = im2col_content(emb_table, s_content, P_SEC)
    snodep = embedding_bag_mean(nv_table, se_p, so_p, batch)
    snoden = embedding_bag_mean(nv_table, se_n, so_n, batch)
    snode = jnp.concatenate([snodep, snoden], axis=0)                 # [2B, NV]

    inputs = (
        u_unf, unode, s_unf, snode,
        params["wu_conv"], params["bu_conv"],
        params["ws_conv"], params["bs_conv"],
        params["w_ul"], params["b_ul"],
        params["w_ulc_h"], params["w_ulc_n"], params["b_ulc"],
        params["w_sl"], params["b_sl"],
        params["w_slc_h"], params["w_slc_n"], params["b_slc"],
        params["fm_v_u"], params["fm_v_s"],
        params["fm_w_u"], params["fm_w_s"],
        params["fm_b"], params["w_out"], params["b_out"],
    )

    vmem = pl.BlockSpec(memory_space=pltpu.MemorySpace.VMEM)
    smem = pl.BlockSpec(memory_space=pltpu.MemorySpace.SMEM)

    out = pl.pallas_call(
        forward_kernel,
        out_shape=jax.ShapeDtypeStruct((batch, LANE), jnp.float32),
        in_specs=[vmem] * 22 + [smem] * 3,
        out_specs=vmem,
    )(*inputs)
    return out[:, 0]  # torch.squeeze(..., -1)


forward = jax.jit(_forward)


def init_params(key):
    ks = jax.random.split(key, 16)

    def w(k, shape, scale=0.1):
        return jax.random.normal(k, shape, jnp.float32) * scale

    pad_c = C_PAD - NUM_KERNELS

    # Conv weights in im2col layout [K*D, C]; torch [C,1,K,D] maps via
    # weight.reshape(C, K*D).T. Channel axis zero-padded to C_PAD (inert).
    wu_conv = jnp.pad(w(ks[0], (KD, NUM_KERNELS)), ((0, 0), (0, pad_c)))
    ws_conv = jnp.pad(w(ks[2], (KD, NUM_KERNELS)), ((0, 0), (0, pad_c)))
    # Linear weights stored transposed ([in, out]); concat-layers pre-split.
    w_ulc = w(ks[6], (LF_DEEPCONN + NV_DIM, LF_USER))
    w_slc = w(ks[10], (LF_DEEPCONN + NV_DIM, LF_SEC))
    fm_v = w(ks[12], (N_FM, N_FM))
    fm_w = w(ks[13], (N_FM, 1))

    return dict(
        wu_conv=wu_conv.astype(jnp.bfloat16),
        bu_conv=jnp.pad(w(ks[1], (1, NUM_KERNELS)), ((0, 0), (0, pad_c))),
        ws_conv=ws_conv.astype(jnp.bfloat16),
        bs_conv=jnp.pad(w(ks[3], (1, NUM_KERNELS)), ((0, 0), (0, pad_c))),
        w_ul=jnp.pad(w(ks[4], (NUM_KERNELS, LF_DEEPCONN)), ((0, pad_c), (0, 0))),
        b_ul=w(ks[5], (1, LF_DEEPCONN)),
        w_ulc_h=w_ulc[:LF_DEEPCONN],
        w_ulc_n=w_ulc[LF_DEEPCONN:],
        b_ulc=w(ks[7], (1, LF_USER)),
        w_sl=jnp.pad(w(ks[8], (NUM_KERNELS, LF_DEEPCONN)), ((0, pad_c), (0, 0))),
        b_sl=w(ks[9], (1, LF_DEEPCONN)),
        w_slc_h=w_slc[:LF_DEEPCONN],
        w_slc_n=w_slc[LF_DEEPCONN:],
        b_slc=w(ks[11], (1, LF_SEC)),
        fm_v_u=fm_v[:LF_USER],
        fm_v_s=fm_v[LF_USER:],
        fm_w_u=fm_w[:LF_USER],
        fm_w_s=fm_w[LF_USER:],
        fm_b=w(ks[14], (1, 1)),
        w_out=w(ks[15], (1, 1)),
        b_out=jnp.zeros((1, 1), jnp.float32),
    )


# ---------------------------------- main --------------------------------------
if __name__ == "__main__":
    key = jax.random.PRNGKey(0)
    (k_param, k_emb, k_nv, k_uc, k_scp, k_scn,
     k_ue, k_sep, k_sen) = jax.random.split(key, 9)

    params = init_params(k_param)
    # synthetic (frozen) embedding tables standing in for create_embedding_layer
    # and node2vec_embedding
    emb_table = jax.random.normal(k_emb, (VOCAB, EMB_DIM), jnp.float32) * 0.1
    nv_table = jax.random.normal(k_nv, (NV_VOCAB, NV_DIM), jnp.float32) * 0.1

    user_content = jax.random.randint(k_uc, (B, MAX_LEN_USER), 0, VOCAB)
    sec_content_pos = jax.random.randint(k_scp, (B, MAX_LEN_SEC), 0, VOCAB)
    sec_content_neg = jax.random.randint(k_scn, (B, MAX_LEN_SEC), 0, VOCAB)

    bag = 2  # two node2vec indices per bag
    user_emb = jax.random.randint(k_ue, (B * bag,), 0, NV_VOCAB)
    sec_emb_pos = jax.random.randint(k_sep, (B * bag,), 0, NV_VOCAB)
    sec_emb_neg = jax.random.randint(k_sen, (B * bag,), 0, NV_VOCAB)
    offsets = jnp.arange(B, dtype=jnp.int32) * bag

    out = forward(
        params, emb_table, nv_table,
        user_content, user_emb, offsets,
        (sec_content_pos, sec_emb_pos, offsets),
        (sec_content_neg, sec_emb_neg, offsets),
    )
    jax.block_until_ready(out)
    assert out.shape == (B,), out.shape
    print("KERNEL_OK")
</pallas_src>

<mosaic_0001>
module attributes {stable_mosaic.version = 11 : i64} {
  func.func @forward_kernel(%arg0: memref<32x160xbf16, #tpu.memory_space<vmem>>, %arg1: memref<2x8xf32, #tpu.memory_space<vmem>>, %arg2: memref<64x160xbf16, #tpu.memory_space<vmem>>, %arg3: memref<4x8xf32, #tpu.memory_space<vmem>>, %arg4: memref<160x128xbf16, #tpu.memory_space<vmem>>, %arg5: memref<1x128xf32, #tpu.memory_space<vmem>>, %arg6: memref<160x128xbf16, #tpu.memory_space<vmem>>, %arg7: memref<1x128xf32, #tpu.memory_space<vmem>>, %arg8: memref<128x16xf32, #tpu.memory_space<vmem>>, %arg9: memref<1x16xf32, #tpu.memory_space<vmem>>, %arg10: memref<16x10xf32, #tpu.memory_space<vmem>>, %arg11: memref<8x10xf32, #tpu.memory_space<vmem>>, %arg12: memref<1x10xf32, #tpu.memory_space<vmem>>, %arg13: memref<128x16xf32, #tpu.memory_space<vmem>>, %arg14: memref<1x16xf32, #tpu.memory_space<vmem>>, %arg15: memref<16x10xf32, #tpu.memory_space<vmem>>, %arg16: memref<8x10xf32, #tpu.memory_space<vmem>>, %arg17: memref<1x10xf32, #tpu.memory_space<vmem>>, %arg18: memref<10x20xf32, #tpu.memory_space<vmem>>, %arg19: memref<10x20xf32, #tpu.memory_space<vmem>>, %arg20: memref<10x1xf32, #tpu.memory_space<vmem>>, %arg21: memref<10x1xf32, #tpu.memory_space<vmem>>, %arg22: memref<1x1xf32, #tpu.memory_space<smem>>, %arg23: memref<1x1xf32, #tpu.memory_space<smem>>, %arg24: memref<1x1xf32, #tpu.memory_space<smem>>, %arg25: memref<2x128xf32, #tpu.memory_space<vmem>>) attributes {dimension_semantics = [], scalar_prefetch = 0 : i64, scratch_operands = 0 : i64, tpu.core_type = #tpu.core_type<tc>} {
    %c0 = arith.constant 0 : index
    %c0_0 = arith.constant 0 : index
    %0 = vector.load %arg0[%c0, %c0_0] : memref<32x160xbf16, #tpu.memory_space<vmem>>, vector<32x160xbf16>
    %c0_1 = arith.constant 0 : index
    %c0_2 = arith.constant 0 : index
    %1 = vector.load %arg1[%c0_1, %c0_2] : memref<2x8xf32, #tpu.memory_space<vmem>>, vector<2x8xf32>
    %c0_3 = arith.constant 0 : index
    %c0_4 = arith.constant 0 : index
    %2 = vector.load %arg4[%c0_3, %c0_4] : memref<160x128xbf16, #tpu.memory_space<vmem>>, vector<160x128xbf16>
    %c0_5 = arith.constant 0 : index
    %c0_6 = arith.constant 0 : index
    %3 = vector.load %arg5[%c0_5, %c0_6] : memref<1x128xf32, #tpu.memory_space<vmem>>, vector<1x128xf32>
    %c0_7 = arith.constant 0 : index
    %c0_8 = arith.constant 0 : index
    %4 = vector.load %arg8[%c0_7, %c0_8] : memref<128x16xf32, #tpu.memory_space<vmem>>, vector<128x16xf32>
    %c0_9 = arith.constant 0 : index
    %c0_10 = arith.constant 0 : index
    %5 = vector.load %arg9[%c0_9, %c0_10] : memref<1x16xf32, #tpu.memory_space<vmem>>, vector<1x16xf32>
    %c0_11 = arith.constant 0 : index
    %c0_12 = arith.constant 0 : index
    %6 = vector.load %arg10[%c0_11, %c0_12] : memref<16x10xf32, #tpu.memory_space<vmem>>, vector<16x10xf32>
    %c0_13 = arith.constant 0 : index
    %c0_14 = arith.constant 0 : index
    %7 = vector.load %arg11[%c0_13, %c0_14] : memref<8x10xf32, #tpu.memory_space<vmem>>, vector<8x10xf32>
    %c0_15 = arith.constant 0 : index
    %c0_16 = arith.constant 0 : index
    %8 = vector.load %arg12[%c0_15, %c0_16] : memref<1x10xf32, #tpu.memory_space<vmem>>, vector<1x10xf32>
    %cst = arith.constant dense<0.000000e+00> : vector<32x128xf32>
    %9 = tpu.matmul %0, %2, %cst {dimension_numbers = #tpu.dot_dimension_numbers<[1], [0], [0], [1], [0, 0, 1, 1], [], []>} : vector<32x160xbf16>, vector<160x128xbf16>, vector<32x128xf32> -> vector<32x128xf32>
    %10 = vector.broadcast %3 : vector<1x128xf32> to vector<32x128xf32>
    %11 = arith.addf %9, %10 : vector<32x128xf32>
    %cst_17 = arith.constant 0.000000e+00 : f32
    %12 = vector.broadcast %cst_17 : f32 to vector<32x128xf32>
    %13 = arith.maximumf %11, %12 : vector<32x128xf32>
    %14 = vector.shape_cast %13 : vector<32x128xf32> to vector<2x16x128xf32>
    %15 = tpu.iota {dimensions = array<i32: 1>} : vector<2x16x1xi32>
    %c12_i32 = arith.constant 12 : i32
    %16 = vector.broadcast %c12_i32 : i32 to vector<2x16x1xi32>
    %17 = arith.cmpi slt, %15, %16 : vector<2x16x1xi32>
    %cst_18 = arith.constant 0.000000e+00 : f32
    %18 = vector.shape_cast %17 : vector<2x16x1xi1> to vector<2x16x1xi1>
    %19 = vector.broadcast %18 : vector<2x16x1xi1> to vector<2x16x128xi1>
    %20 = vector.broadcast %cst_18 : f32 to vector<2x16x128xf32>
    %21 = arith.select %19, %14, %20 : vector<2x16x128xi1>, vector<2x16x128xf32>
    %cst_19 = arith.constant dense<0xFF800000> : vector<2x128xf32>
    %22 = vector.multi_reduction <maximumf>, %21, %cst_19 [1] : vector<2x16x128xf32> to vector<2x128xf32>
    %cst_20 = arith.constant dense<0.000000e+00> : vector<2x16xf32>
    %23 = tpu.matmul %22, %4, %cst_20 {dimension_numbers = #tpu.dot_dimension_numbers<[1], [0], [0], [1], [0, 0, 1, 1], [], []>} : vector<2x128xf32>, vector<128x16xf32>, vector<2x16xf32> -> vector<2x16xf32>
    %24 = vector.broadcast %5 : vector<1x16xf32> to vector<2x16xf32>
    %25 = arith.addf %23, %24 : vector<2x16xf32>
    %cst_21 = arith.constant 0.000000e+00 : f32
    %26 = vector.broadcast %cst_21 : f32 to vector<2x16xf32>
    %27 = arith.maximumf %25, %26 : vector<2x16xf32>
    %cst_22 = arith.constant dense<0.000000e+00> : vector<2x10xf32>
    %28 = tpu.matmul %27, %6, %cst_22 {dimension_numbers = #tpu.dot_dimension_numbers<[1], [0], [0], [1], [0, 0, 1, 1], [], []>} : vector<2x16xf32>, vector<16x10xf32>, vector<2x10xf32> -> vector<2x10xf32>
    %cst_23 = arith.constant dense<0.000000e+00> : vector<2x10xf32>
    %29 = tpu.matmul %1, %7, %cst_23 {dimension_numbers = #tpu.dot_dimension_numbers<[1], [0], [0], [1], [0, 0, 1, 1], [], []>} : vector<2x8xf32>, vector<8x10xf32>, vector<2x10xf32> -> vector<2x10xf32>
    %30 = arith.addf %28, %29 : vector<2x10xf32>
    %31 = vector.broadcast %8 : vector<1x10xf32> to vector<2x10xf32>
    %32 = arith.addf %30, %31 : vector<2x10xf32>
    %cst_24 = arith.constant 0.000000e+00 : f32
    %33 = vector.broadcast %cst_24 : f32 to vector<2x10xf32>
    %34 = arith.maximumf %32, %33 : vector<2x10xf32>
    %c0_25 = arith.constant 0 : index
    %c0_26 = arith.constant 0 : index
    %35 = vector.load %arg2[%c0_25, %c0_26] : memref<64x160xbf16, #tpu.memory_space<vmem>>, vector<64x160xbf16>
    %c0_27 = arith.constant 0 : index
    %c0_28 = arith.constant 0 : index
    %36 = vector.load %arg3[%c0_27, %c0_28] : memref<4x8xf32, #tpu.memory_space<vmem>>, vector<4x8xf32>
    %c0_29 = arith.constant 0 : index
    %c0_30 = arith.constant 0 : index
    %37 = vector.load %arg6[%c0_29, %c0_30] : memref<160x128xbf16, #tpu.memory_space<vmem>>, vector<160x128xbf16>
    %c0_31 = arith.constant 0 : index
    %c0_32 = arith.constant 0 : index
    %38 = vector.load %arg7[%c0_31, %c0_32] : memref<1x128xf32, #tpu.memory_space<vmem>>, vector<1x128xf32>
    %c0_33 = arith.constant 0 : index
    %c0_34 = arith.constant 0 : index
    %39 = vector.load %arg13[%c0_33, %c0_34] : memref<128x16xf32, #tpu.memory_space<vmem>>, vector<128x16xf32>
    %c0_35 = arith.constant 0 : index
    %c0_36 = arith.constant 0 : index
    %40 = vector.load %arg14[%c0_35, %c0_36] : memref<1x16xf32, #tpu.memory_space<vmem>>, vector<1x16xf32>
    %c0_37 = arith.constant 0 : index
    %c0_38 = arith.constant 0 : index
    %41 = vector.load %arg15[%c0_37, %c0_38] : memref<16x10xf32, #tpu.memory_space<vmem>>, vector<16x10xf32>
    %c0_39 = arith.constant 0 : index
    %c0_40 = arith.constant 0 : index
    %42 = vector.load %arg16[%c0_39, %c0_40] : memref<8x10xf32, #tpu.memory_space<vmem>>, vector<8x10xf32>
    %c0_41 = arith.constant 0 : index
    %c0_42 = arith.constant 0 : index
    %43 = vector.load %arg17[%c0_41, %c0_42] : memref<1x10xf32, #tpu.memory_space<vmem>>, vector<1x10xf32>
    %cst_43 = arith.constant dense<0.000000e+00> : vector<64x128xf32>
    %44 = tpu.matmul %35, %37, %cst_43 {dimension_numbers = #tpu.dot_dimension_numbers<[1], [0], [0], [1], [0, 0, 1, 1], [], []>} : vector<64x160xbf16>, vector<160x128xbf16>, vector<64x128xf32> -> vector<64x128xf32>
    %45 = vector.broadcast %38 : vector<1x128xf32> to vector<64x128xf32>
    %46 = arith.addf %44, %45 : vector<64x128xf32>
    %cst_44 = arith.constant 0.000000e+00 : f32
    %47 = vector.broadcast %cst_44 : f32 to vector<64x128xf32>
    %48 = arith.maximumf %46, %47 : vector<64x128xf32>
    %49 = vector.shape_cast %48 : vector<64x128xf32> to vector<4x16x128xf32>
    %50 = tpu.iota {dimensions = array<i32: 1>} : vector<4x16x1xi32>
    %c12_i32_45 = arith.constant 12 : i32
    %51 = vector.broadcast %c12_i32_45 : i32 to vector<4x16x1xi32>
    %52 = arith.cmpi slt, %50, %51 : vector<4x16x1xi32>
    %cst_46 = arith.constant 0.000000e+00 : f32
    %53 = vector.shape_cast %52 : vector<4x16x1xi1> to vector<4x16x1xi1>
    %54 = vector.broadcast %53 : vector<4x16x1xi1> to vector<4x16x128xi1>
    %55 = vector.broadcast %cst_46 : f32 to vector<4x16x128xf32>
    %56 = arith.select %54, %49, %55 : vector<4x16x128xi1>, vector<4x16x128xf32>
    %cst_47 = arith.constant dense<0xFF800000> : vector<4x128xf32>
    %57 = vector.multi_reduction <maximumf>, %56, %cst_47 [1] : vector<4x16x128xf32> to vector<4x128xf32>
    %cst_48 = arith.constant dense<0.000000e+00> : vector<4x16xf32>
    %58 = tpu.matmul %57, %39, %cst_48 {dimension_numbers = #tpu.dot_dimension_numbers<[1], [0], [0], [1], [0, 0, 1, 1], [], []>} : vector<4x128xf32>, vector<128x16xf32>, vector<4x16xf32> -> vector<4x16xf32>
    %59 = vector.broadcast %40 : vector<1x16xf32> to vector<4x16xf32>
    %60 = arith.addf %58, %59 : vector<4x16xf32>
    %cst_49 = arith.constant 0.000000e+00 : f32
    %61 = vector.broadcast %cst_49 : f32 to vector<4x16xf32>
    %62 = arith.maximumf %60, %61 : vector<4x16xf32>
    %cst_50 = arith.constant dense<0.000000e+00> : vector<4x10xf32>
    %63 = tpu.matmul %62, %41, %cst_50 {dimension_numbers = #tpu.dot_dimension_numbers<[1], [0], [0], [1], [0, 0, 1, 1], [], []>} : vector<4x16xf32>, vector<16x10xf32>, vector<4x10xf32> -> vector<4x10xf32>
    %cst_51 = arith.constant dense<0.000000e+00> : vector<4x10xf32>
    %64 = tpu.matmul %36, %42, %cst_51 {dimension_numbers = #tpu.dot_dimension_numbers<[1], [0], [0], [1], [0, 0, 1, 1], [], []>} : vector<4x8xf32>, vector<8x10xf32>, vector<4x10xf32> -> vector<4x10xf32>
    %65 = arith.addf %63, %64 : vector<4x10xf32>
    %66 = vector.broadcast %43 : vector<1x10xf32> to vector<4x10xf32>
    %67 = arith.addf %65, %66 : vector<4x10xf32>
    %cst_52 = arith.constant 0.000000e+00 : f32
    %68 = vector.broadcast %cst_52 : f32 to vector<4x10xf32>
    %69 = arith.maximumf %67, %68 : vector<4x10xf32>
    %c0_53 = arith.constant 0 : index
    %c0_54 = arith.constant 0 : index
    %70 = memref.load %arg22[%c0_53, %c0_54] : memref<1x1xf32, #tpu.memory_space<smem>>
    %c0_55 = arith.constant 0 : index
    %c0_56 = arith.constant 0 : index
    %71 = memref.load %arg23[%c0_55, %c0_56] : memref<1x1xf32, #tpu.memory_space<smem>>
    %c0_57 = arith.constant 0 : index
    %c0_58 = arith.constant 0 : index
    %72 = memref.load %arg24[%c0_57, %c0_58] : memref<1x1xf32, #tpu.memory_space<smem>>
    %c0_59 = arith.constant 0 : index
    %c0_60 = arith.constant 0 : index
    %73 = vector.load %arg18[%c0_59, %c0_60] : memref<10x20xf32, #tpu.memory_space<vmem>>, vector<10x20xf32>
    %c0_61 = arith.constant 0 : index
    %c0_62 = arith.constant 0 : index
    %74 = vector.load %arg19[%c0_61, %c0_62] : memref<10x20xf32, #tpu.memory_space<vmem>>, vector<10x20xf32>
    %cst_63 = arith.constant dense<0.000000e+00> : vector<2x20xf32>
    %75 = tpu.matmul %34, %73, %cst_63 {dimension_numbers = #tpu.dot_dimension_numbers<[1], [0], [0], [1], [0, 0, 1, 1], [], []>} : vector<2x10xf32>, vector<10x20xf32>, vector<2x20xf32> -> vector<2x20xf32>
    %76 = arith.mulf %34, %34 : vector<2x10xf32>
    %77 = arith.mulf %73, %73 : vector<10x20xf32>
    %cst_64 = arith.constant dense<0.000000e+00> : vector<2x20xf32>
    %78 = tpu.matmul %76, %77, %cst_64 {dimension_numbers = #tpu.dot_dimension_numbers<[1], [0], [0], [1], [0, 0, 1, 1], [], []>} : vector<2x10xf32>, vector<10x20xf32>, vector<2x20xf32> -> vector<2x20xf32>
    %c0_65 = arith.constant 0 : index
    %c0_66 = arith.constant 0 : index
    %79 = vector.load %arg20[%c0_65, %c0_66] : memref<10x1xf32, #tpu.memory_space<vmem>>, vector<10x1xf32>
    %cst_67 = arith.constant dense<0.000000e+00> : vector<2x1xf32>
    %80 = tpu.matmul %34, %79, %cst_67 {dimension_numbers = #tpu.dot_dimension_numbers<[1], [0], [0], [1], [0, 0, 1, 1], [], []>} : vector<2x10xf32>, vector<10x1xf32>, vector<2x1xf32> -> vector<2x1xf32>
    %cst_68 = arith.constant dense<0.000000e+00> : vector<4x20xf32>
    %81 = tpu.matmul %69, %74, %cst_68 {dimension_numbers = #tpu.dot_dimension_numbers<[1], [0], [0], [1], [0, 0, 1, 1], [], []>} : vector<4x10xf32>, vector<10x20xf32>, vector<4x20xf32> -> vector<4x20xf32>
    %82 = arith.mulf %69, %69 : vector<4x10xf32>
    %83 = arith.mulf %74, %74 : vector<10x20xf32>
    %cst_69 = arith.constant dense<0.000000e+00> : vector<4x20xf32>
    %84 = tpu.matmul %82, %83, %cst_69 {dimension_numbers = #tpu.dot_dimension_numbers<[1], [0], [0], [1], [0, 0, 1, 1], [], []>} : vector<4x10xf32>, vector<10x20xf32>, vector<4x20xf32> -> vector<4x20xf32>
    %c0_70 = arith.constant 0 : index
    %c0_71 = arith.constant 0 : index
    %85 = vector.load %arg21[%c0_70, %c0_71] : memref<10x1xf32, #tpu.memory_space<vmem>>, vector<10x1xf32>
    %cst_72 = arith.constant dense<0.000000e+00> : vector<4x1xf32>
    %86 = tpu.matmul %69, %85, %cst_72 {dimension_numbers = #tpu.dot_dimension_numbers<[1], [0], [0], [1], [0, 0, 1, 1], [], []>} : vector<4x10xf32>, vector<10x1xf32>, vector<4x1xf32> -> vector<4x1xf32>
    %87 = vector.extract_strided_slice %81 {offsets = [0, 0], sizes = [2, 20], strides = [1, 1]} : vector<4x20xf32> to vector<2x20xf32>
    %88 = vector.extract_strided_slice %84 {offsets = [0, 0], sizes = [2, 20], strides = [1, 1]} : vector<4x20xf32> to vector<2x20xf32>
    %89 = vector.extract_strided_slice %86 {offsets = [0, 0], sizes = [2, 1], strides = [1, 1]} : vector<4x1xf32> to vector<2x1xf32>
    %90 = arith.addf %75, %87 : vector<2x20xf32>
    %91 = arith.addf %78, %88 : vector<2x20xf32>
    %92 = arith.mulf %90, %90 : vector<2x20xf32>
    %93 = arith.subf %92, %91 : vector<2x20xf32>
    %cst_73 = arith.constant dense<0.000000e+00> : vector<2xf32>
    %94 = vector.multi_reduction <add>, %93, %cst_73 [1] : vector<2x20xf32> to vector<2xf32>
    %95 = vector.shape_cast %94 : vector<2xf32> to vector<2x1xf32>
    %cst_74 = arith.constant 5.000000e-01 : f32
    %96 = vector.broadcast %cst_74 : f32 to vector<2x1xf32>
    %97 = arith.mulf %96, %95 : vector<2x1xf32>
    %98 = arith.addf %80, %89 : vector<2x1xf32>
    %99 = vector.broadcast %70 : f32 to vector<2x1xf32>
    %100 = arith.addf %98, %99 : vector<2x1xf32>
    %101 = arith.addf %100, %97 : vector<2x1xf32>
    %102 = vector.broadcast %71 : f32 to vector<2x1xf32>
    %103 = arith.mulf %101, %102 : vector<2x1xf32>
    %104 = vector.broadcast %72 : f32 to vector<2x1xf32>
    %105 = arith.addf %103, %104 : vector<2x1xf32>
    %106 = vector.extract_strided_slice %81 {offsets = [2, 0], sizes = [2, 20], strides = [1, 1]} : vector<4x20xf32> to vector<2x20xf32>
    %107 = vector.extract_strided_slice %84 {offsets = [2, 0], sizes = [2, 20], strides = [1, 1]} : vector<4x20xf32> to vector<2x20xf32>
    %108 = vector.extract_strided_slice %86 {offsets = [2, 0], sizes = [2, 1], strides = [1, 1]} : vector<4x1xf32> to vector<2x1xf32>
    %109 = arith.addf %75, %106 : vector<2x20xf32>
    %110 = arith.addf %78, %107 : vector<2x20xf32>
    %111 = arith.mulf %109, %109 : vector<2x20xf32>
    %112 = arith.subf %111, %110 : vector<2x20xf32>
    %cst_75 = arith.constant dense<0.000000e+00> : vector<2xf32>
    %113 = vector.multi_reduction <add>, %112, %cst_75 [1] : vector<2x20xf32> to vector<2xf32>
    %114 = vector.shape_cast %113 : vector<2xf32> to vector<2x1xf32>
    %cst_76 = arith.constant 5.000000e-01 : f32
    %115 = vector.broadcast %cst_76 : f32 to vector<2x1xf32>
    %116 = arith.mulf %115, %114 : vector<2x1xf32>
    %117 = arith.addf %80, %108 : vector<2x1xf32>
    %118 = vector.broadcast %70 : f32 to vector<2x1xf32>
    %119 = arith.addf %117, %118 : vector<2x1xf32>
    %120 = arith.addf %119, %116 : vector<2x1xf32>
    %121 = vector.broadcast %71 : f32 to vector<2x1xf32>
    %122 = arith.mulf %120, %121 : vector<2x1xf32>
    %123 = vector.broadcast %72 : f32 to vector<2x1xf32>
    %124 = arith.addf %122, %123 : vector<2x1xf32>
    %125 = arith.subf %105, %124 : vector<2x1xf32>
    %126 = arith.negf %125 : vector<2x1xf32>
    %127 = math.exp %126 : vector<2x1xf32>
    %cst_77 = arith.constant 1.000000e+00 : f32
    %128 = vector.broadcast %cst_77 : f32 to vector<2x1xf32>
    %129 = arith.addf %128, %127 : vector<2x1xf32>
    %130 = arith.divf %128, %129 : vector<2x1xf32>
    %131 = vector.shape_cast %130 : vector<2x1xf32> to vector<2x1xf32>
    %132 = vector.broadcast %131 : vector<2x1xf32> to vector<2x128xf32>
    %c0_78 = arith.constant 0 : index
    %c0_79 = arith.constant 0 : index
    %133 = vector.load %arg25[%c0_78, %c0_79] : memref<2x128xf32, #tpu.memory_space<vmem>>, vector<2x128xf32>
    tpu.vector_store %arg25[%c0_78, %c0_79], %132 {strides = array<i32>} : memref<2x128xf32, #tpu.memory_space<vmem>>, vector<2x128xf32>,
    return
  }
}

</mosaic_0001>

<bundles_post_ra>
// kernel: custom-call.5
= control target key start
LH: loop header
LB: loop body
LE: loop exit
PB: predicated region body
PF: predicated region fallthrough
CT: control target
= control target key end

     0   :  { %s6_s0 = inlined_call_operand.vmem [shape: u32[4], index: 0, kind: output, shape index: {}]  }

// kernel: _forward.1
= control target key start
LH: loop header
LB: loop body
LE: loop exit
PB: predicated region body
PF: predicated region fallthrough
CT: control target
= control target key end

     0   :  { %v1966_v0 = vmov 0   ;;  %v1967_v2 = vmov 0.0|0.0   ;;  %vm215_vm0 = vcmask 261120   ;;  %vm1968_vm1 = vmmov 0   ;;  %s2492_s4 = inlined_call_operand.vmem [shape: bf16[160,128], index: 4, kind: input, shape index: {}]   ;;  %s2493_s0 = inlined_call_operand.vmem [shape: bf16[32,160], index: 0, kind: input, shape index: {}]   ;;  %s2494_s6 = inlined_call_operand.vmem [shape: bf16[160,128], index: 6, kind: input, shape index: {}]   ;;  %s2495_s2 = inlined_call_operand.vmem [shape: bf16[64,160], index: 2, kind: input, shape index: {}]   ;;  %s2496_s8 = inlined_call_operand.vmem [shape: f32[128,16], index: 8, kind: input, shape index: {}]   ;;  %s2497_s5 = inlined_call_operand.vmem [shape: f32[1,128], index: 5, kind: input, shape index: {}]   ;;  %s2498_s11 = inlined_call_operand.vmem [shape: f32[8,10], index: 11, kind: input, shape index: {}]   ;;  %s2499_s7 = inlined_call_operand.vmem [shape: f32[1,128], index: 7, kind: input, shape index: {}]   ;;  %s2500_s10 = inlined_call_operand.vmem [shape: f32[16,10], index: 10, kind: input, shape index: {}]   ;;  %s2501_s1 = inlined_call_operand.vmem [shape: f32[2,8], index: 1, kind: input, shape index: {}]   ;;  %s2502_s9 = inlined_call_operand.vmem [shape: f32[1,16], index: 9, kind: input, shape index: {}]   ;;  %s2503_s13 = inlined_call_operand.vmem [shape: f32[128,16], index: 13, kind: input, shape index: {}]   ;;  %s2504_s16 = inlined_call_operand.vmem [shape: f32[8,10], index: 16, kind: input, shape index: {}]   ;;  %s2505_s3 = inlined_call_operand.vmem [shape: f32[4,8], index: 3, kind: input, shape index: {}]   ;;  %s2506_s15 = inlined_call_operand.vmem [shape: f32[16,10], index: 15, kind: input, shape index: {}]   ;;  %s2507_s14 = inlined_call_operand.vmem [shape: f32[1,16], index: 14, kind: input, shape index: {}]   ;;  %s2508_s18 = inlined_call_operand.vmem [shape: f32[10,20], index: 18, kind: input, shape index: {}]   ;;  %s2509_s12 = inlined_call_operand.vmem [shape: f32[1,10], index: 12, kind: input, shape index: {}]   ;;  %s2510_s20 = inlined_call_operand.vmem [shape: f32[10,1], index: 20, kind: input, shape index: {}]   ;;  %s2511_s19 = inlined_call_operand.vmem [shape: f32[10,20], index: 19, kind: input, shape index: {}]   ;;  %s2512_s17 = inlined_call_operand.vmem [shape: f32[1,10], index: 17, kind: input, shape index: {}]   ;;  %s2513_s21 = inlined_call_operand.vmem [shape: f32[10,1], index: 21, kind: input, shape index: {}]   ;;  %s2514_s22 = inlined_call_operand.<no memory space> [shape: f32[1,1], index: 22, kind: input, shape index: {}]   ;;  %s2515_s23 = inlined_call_operand.<no memory space> [shape: f32[1,1], index: 23, kind: input, shape index: {}]   ;;  %s2516_s24 = inlined_call_operand.<no memory space> [shape: f32[1,1], index: 24, kind: input, shape index: {}]   ;;  %s2517_s25 = inlined_call_operand.vmem [shape: f32[2,128], index: 25, kind: output, shape index: {}]  }
   0x1   :  { %2524 = sst [smem:[#allocation5_spill]] %s2492_s4  ;;  %222 = vmatprep.subr.bf16.mxu0 %v1966_v0  ;;  %1839 = vmatprep.subr.bf16.mxu1 %v1967_v2  ;;  %v1969_v58 = vmov 0.0   ;;  %v275_v59 = vlaneseq  ;;  %vm310_vm3 = vcmask 1041409   ;;  %vm384_vm4 = vcmask 64512  }
   0x2   :  { %2525 = sst [smem:[#allocation6_spill]] %s2493_s0  ;;  %1922 = vset.pattern.permute.xlu1 %v1966_v0  ;;  %1923 = vset.pattern.permute.xlu0 %v1966_v0  ;;  %vm825_vm5 = vcmask 1042434   ;;  %vm827_vm6 = vcmask 1043459   ;;  %vm458_vm7 = vcmask 130048   ;;  %vm1066_vm8 = vcmask 1041408  }
   0x3   :  { %2526 = sst [smem:[#allocation7_spill]] %s2494_s6  ;;  %1735 = vmatprep.mubr.msk.f32.mxu1 %vm1968_vm1, %v1969_v58  ;;  %v276_v60 = vshrl.u32 %v275_v59, 7  ;;  %vm1970_vm9 = vmmov 1   ;;  %vm1062_vm11 = vcmask 80896   ;;  %vm1528_vm12 = vcmask 156672  }
   0x4   :  { %2527 = sst [smem:[#allocation8_spill]] %s2495_s2  ;;  %s2536_s30 = sld [smem:[#allocation7_spill]]  ;;  %vm2419_vm10 = vmpackc.low %vm1066_vm8, %vm1970_vm9 }
   0x5   :  { %2528 = sst [smem:[#allocation9_spill]] %s2496_s8  ;;  %s2535_s8 = sld [smem:[#allocation6_spill]]  ;;  %v2287_v63 = vadd.s32 8, %v276_v60 }
   0x6   :  { %2529 = sst [smem:[#allocation10_spill]] %s2497_s5  ;;  %s2537_s28 = sld [smem:[#allocation8_spill]] }
   0x7   :  { %2530 = sst [smem:[#allocation11_spill]] %s2498_s11  ;;  %s2534_s11 = sld [smem:[#allocation5_spill]]  ;;  %vm279_vm2 = vcmp.lt.s32.totalorder %v2287_v63, 12 }
   0x8   :  { %2531 = sst [smem:[#allocation12_spill]] %s2499_s7  ;;  %s2538_s26 = sld [smem:[#allocation9_spill]] }
   0x9   :  { %2532 = sst [smem:[#allocation13_spill]] %s2500_s10  ;;  %s2539_s0 = sld [smem:[#allocation10_spill]] }
   0xa   :  { %2533 = sst [smem:[#allocation14_spill]] %s2501_s1  ;;  %v1940_v15 = vld [vmem:[%s2536_s30] sm:$0xff]   ;;  %v1941_v16 = vld [vmem:[%s2536_s30 + $0x8] sm:$0xff]   ;;  %v1942_v18 = vld [vmem:[%s2536_s30 + $0x10] sm:$0xff]   ;;  %s2540_s10 = sld [smem:[#allocation11_spill]] }
   0xb   :  { %v1936_v6 = vld [vmem:[%s2535_s8 + $0x4] ss:$8 sps:$4 sm:$0xff]   ;;  %v1934_v13 = vld [vmem:[%s2535_s8] ss:$8 sps:$4 sm:$0xff]   ;;  %v1937_v14 = vld [vmem:[%s2535_s8 + $0x14] ss:$8 sps:$4 sm:$0xff]  }
   0xc   :  { %1595 = vmatprep.mubr.msk.bf16.mxu0 %vm215_vm0, %v1936_v6  ;;  %v1939_v17 = vld [vmem:[%s2535_s8 + $0x10] ss:$8 sps:$4 sm:$0xff]   ;;  %v1952_v19 = vld [vmem:[%s2537_s28 + $0x4] ss:$8 sps:$4 sm:$0xff]   ;;  %v1950_v27 = vld [vmem:[%s2537_s28] ss:$8 sps:$4 sm:$0xff]  }
   0xd   :  { %v1924_v1 = vld [vmem:[%s2534_s11] sm:$0xff]   ;;  %v1925_v3 = vld [vmem:[%s2534_s11 + $0x8] sm:$0xff]   ;;  %v1926_v4 = vld [vmem:[%s2534_s11 + $0x10] sm:$0xff]   ;;  %s2541_s5 = sld [smem:[#allocation12_spill]]  ;;  %s2542_s29 = sld [smem:[#allocation13_spill]] }
   0xe   :  { %223 = vmatpush1.bf16.msra.mxu0 %v1924_v1  ;;  %v1927_v5 = vld [vmem:[%s2534_s11 + $0x18] sm:$0xff]   ;;  %v1928_v7 = vld [vmem:[%s2534_s11 + $0x20] sm:$0xff]   ;;  %v1929_v8 = vld [vmem:[%s2534_s11 + $0x28] sm:$0xff]   ;;  %s2543_s2 = sld [smem:[#allocation14_spill]] }
   0xf   :  { %224 = vmatprep.subr.bf16.mxu0 %v1966_v0  ;;  %v1930_v9 = vld [vmem:[%s2534_s11 + $0x30] sm:$0xff]   ;;  %v1931_v10 = vld [vmem:[%s2534_s11 + $0x38] sm:$0xff]   ;;  %v1932_v11 = vld [vmem:[%s2534_s11 + $0x40] sm:$0xff]  }
  0x10   :  { %v1933_v12 = vld [vmem:[%s2534_s11 + $0x48] sm:$0xff]   ;;  %v1943_v20 = vld [vmem:[%s2536_s30 + $0x18] sm:$0xff]   ;;  %v1944_v21 = vld [vmem:[%s2536_s30 + $0x20] sm:$0xff]  }
  0x11   :  { %v1945_v22 = vld [vmem:[%s2536_s30 + $0x28] sm:$0xff]   ;;  %v1946_v23 = vld [vmem:[%s2536_s30 + $0x30] sm:$0xff]   ;;  %v1947_v24 = vld [vmem:[%s2536_s30 + $0x38] sm:$0xff]  }
  0x12   :  { %225 = vmatpush1.bf16.msra.mxu0 %v1925_v3  ;;  %v1948_v25 = vld [vmem:[%s2536_s30 + $0x40] sm:$0xff]   ;;  %v1949_v26 = vld [vmem:[%s2536_s30 + $0x48] sm:$0xff]   ;;  %v1953_v28 = vld [vmem:[%s2537_s28 + $0x14] ss:$8 sps:$4 sm:$0xff]  }
  0x13   :  { %226 = vmatprep.subr.bf16.mxu0 %v1966_v0  ;;  %v1955_v29 = vld [vmem:[%s2537_s28 + $0x10] ss:$8 sps:$4 sm:$0xff]   ;;  %v110_v30 = vld [vmem:[%s2538_s26] sm:$0xff]  ;;  %v111_v31 = vld [vmem:[%s2538_s26 + $0x8] sm:$0xff] }
  0x14   :  { %v1840_v32 = vpack.c.bf16 %v111_v31, %v110_v30  ;;  %v112_v33 = vld [vmem:[%s2538_s26 + $0x10] sm:$0xff]  ;;  %v113_v34 = vld [vmem:[%s2538_s26 + $0x18] sm:$0xff]  ;;  %v1956_v36 = vld [vmem:[%s2537_s28 + $0x24] ss:$8 sps:$4 sm:$0xff]  }
  0x15   :  { %v1843_v35 = vpack.c.bf16 %v113_v34, %v112_v33  ;;  %v1958_v37 = vld [vmem:[%s2537_s28 + $0x20] ss:$8 sps:$4 sm:$0xff]   ;;  %v116_v41 = vld [vmem:[%s2538_s26 + $0x30] sm:$0xff]  ;;  %v117_v42 = vld [vmem:[%s2538_s26 + $0x38] sm:$0xff] }
  0x16   :  { %227 = vmatpush1.bf16.msra.mxu0 %v1926_v4  ;;  %1841 = vmatpush3.bf16.msra.mxu1 %v1840_v32  ;;  %v114_v38 = vld [vmem:[%s2538_s26 + $0x20] sm:$0xff]  ;;  %v115_v39 = vld [vmem:[%s2538_s26 + $0x28] sm:$0xff]  ;;  %v1849_v43 = vpack.c.bf16 %v117_v42, %v116_v41  ;;  %v1959_v44 = vld [vmem:[%s2537_s28 + $0x34] ss:$8 sps:$4 sm:$0xff]  }
  0x17   :  { %228 = vmatprep.subr.bf16.mxu0 %v1966_v0  ;;  %1842 = vmatprep.subr.bf16.mxu1 %v1967_v2  ;;  %v1846_v40 = vpack.c.bf16 %v115_v39, %v114_v38  ;;  %v1961_v45 = vld [vmem:[%s2537_s28 + $0x30] ss:$8 sps:$4 sm:$0xff]   ;;  %v118_v46 = vld [vmem:[%s2538_s26 + $0x40] sm:$0xff]  ;;  %v119_v47 = vld [vmem:[%s2538_s26 + $0x48] sm:$0xff] }
  0x18   :  { %v1852_v48 = vpack.c.bf16 %v119_v47, %v118_v46  ;;  %v120_v49 = vld [vmem:[%s2538_s26 + $0x50] sm:$0xff]  ;;  %v121_v50 = vld [vmem:[%s2538_s26 + $0x58] sm:$0xff]  ;;  %v122_v52 = vld [vmem:[%s2538_s26 + $0x60] sm:$0xff] }
  0x19   :  { %v1855_v51 = vpack.c.bf16 %v121_v50, %v120_v49  ;;  %v123_v53 = vld [vmem:[%s2538_s26 + $0x68] sm:$0xff]  ;;  %v124_v55 = vld [vmem:[%s2538_s26 + $0x70] sm:$0xff]  ;;  %v125_v56 = vld [vmem:[%s2538_s26 + $0x78] sm:$0xff] }
  0x1a   :  { %229 = vmatpush1.bf16.msra.mxu0 %v1927_v5  ;;  %1844 = vmatpush3.bf16.msra.mxu1 %v1843_v35  ;;  %v1858_v54 = vpack.c.bf16 %v123_v53, %v122_v52  ;;  %v1861_v57 = vpack.c.bf16 %v125_v56, %v124_v55  ;;  %v1580_v61 = vld [vmem:[%s2539_s0] ss:$0 sm:$0xff]  ;;  %v128_v63 = vld [vmem:[%s2542_s29 + $0x8] sm:$0xff] }
  0x1b   :  { %230 = vmatprep.subr.bf16.mxu0 %v1966_v0  ;;  %1845 = vmatprep.subr.bf16.mxu1 %v1967_v2  ;;  %v129_v32 = vld [vmem:[%s2540_s10] sm:$0xff] }
  0x1c   :  { %v1601_v34 = vld [vmem:[%s2541_s5] ss:$0 sm:$0xff] }
  0x1e   :  { %231 = vmatpush1.bf16.msra.mxu0 %v1928_v7  ;;  %1847 = vmatpush3.bf16.msra.mxu1 %v1846_v40 }
  0x1f   :  { %232 = vmatprep.subr.bf16.mxu0 %v1966_v0  ;;  %1848 = vmatprep.subr.bf16.mxu1 %v1967_v2 }
  0x22   :  { %233 = vmatpush1.bf16.msra.mxu0 %v1929_v8  ;;  %1850 = vmatpush3.bf16.msra.mxu1 %v1849_v43 }
  0x23   :  { %234 = vmatprep.subr.bf16.mxu0 %v1966_v0  ;;  %1851 = vmatprep.subr.bf16.mxu1 %v1967_v2 }
  0x26   :  { %235 = vmatpush1.bf16.msra.mxu0 %v1930_v9  ;;  %1853 = vmatpush3.bf16.msra.mxu1 %v1852_v48 }
  0x27   :  { %236 = vmatprep.subr.bf16.mxu0 %v1966_v0  ;;  %1854 = vmatprep.subr.bf16.mxu1 %v1967_v2 }
  0x2a   :  { %237 = vmatpush1.bf16.msra.mxu0 %v1931_v10  ;;  %1856 = vmatpush3.bf16.msra.mxu1 %v1855_v51 }
  0x2b   :  { %238 = vmatprep.subr.bf16.mxu0 %v1966_v0  ;;  %1857 = vmatprep.subr.bf16.mxu1 %v1967_v2 }
  0x2e   :  { %239 = vmatpush1.bf16.msra.mxu0 %v1932_v11  ;;  %1859 = vmatpush3.bf16.msra.mxu1 %v1858_v54 }
  0x2f   :  { %240 = vmatprep.subr.bf16.mxu0 %v1966_v0  ;;  %1860 = vmatprep.subr.bf16.mxu1 %v1967_v2 }
  0x32   :  { %241 = vmatpush1.bf16.msra.mxu0 %v1933_v12  ;;  %1862 = vmatpush3.bf16.msra.mxu1 %v1861_v57 }
  0x33   :  { %705 = vmatprep.subr.bf16.mxu0 %v1966_v0  ;;  %1738 = vmatprep.subr.mxu1 %v1969_v58 }
  0x35   :  { %255 = vmatmul.mubr.bf16.vlgmr.msra.gmra.mrb[0].mxu0 %v1934_v13 }
  0x36   :  { %1596 = vmatprep.mubr.msk.bf16.mxu0 %vm215_vm0, %v1937_v14  ;;  %706 = vmatpush1.bf16.msra.mxu0 %v1940_v15 }
  0x37   :  { %707 = vmatprep.subr.bf16.mxu0 %v1966_v0 }
  0x3a   :  { %708 = vmatpush1.bf16.msra.mxu0 %v1941_v16 }
  0x3b   :  { %709 = vmatprep.subr.bf16.mxu0 %v1966_v0 }
  0x3d   :  { %263 = vmatmul.mubr.bf16.gmra.mrb[4].mxu0 %v1939_v17 }
  0x3e   :  { %710 = vmatpush1.bf16.msra.mxu0 %v1942_v18  ;;  %1620 = vmatprep.mubr.msk.bf16.mxu0 %vm215_vm0, %v1952_v19 }
  0x3f   :  { %711 = vmatprep.subr.bf16.mxu0 %v1966_v0 }
  0x42   :  { %712 = vmatpush1.bf16.msra.mxu0 %v1943_v20 }
  0x43   :  { %713 = vmatprep.subr.bf16.mxu0 %v1966_v0 }
  0x46   :  { %714 = vmatpush1.bf16.msra.mxu0 %v1944_v21 }
  0x47   :  { %715 = vmatprep.subr.bf16.mxu0 %v1966_v0 }
  0x4a   :  { %716 = vmatpush1.bf16.msra.mxu0 %v1945_v22 }
  0x4b   :  { %717 = vmatprep.subr.bf16.mxu0 %v1966_v0 }
  0x4e   :  { %718 = vmatpush1.bf16.msra.mxu0 %v1946_v23 }
  0x4f   :  { %719 = vmatprep.subr.bf16.mxu0 %v1966_v0 }
  0x52   :  { %720 = vmatpush1.bf16.msra.mxu0 %v1947_v24 }
  0x53   :  { %721 = vmatprep.subr.bf16.mxu0 %v1966_v0 }
  0x56   :  { %722 = vmatpush1.bf16.msra.mxu0 %v1948_v25 }
  0x57   :  { %723 = vmatprep.subr.bf16.mxu0 %v1966_v0 }
  0x5a   :  { %724 = vmatpush1.bf16.msra.mxu0 %v1949_v26 }
  0x5d   :  { %738 = vmatmul.mubr.bf16.vlgmr.msra.gmra.mrb[8].mxu0 %v1950_v27 }
  0x5e   :  { %1621 = vmatprep.mubr.msk.bf16.mxu0 %vm215_vm0, %v1953_v28 }
  0x65   :  { %746 = vmatmul.mubr.bf16.gmra.mrb[12].mxu0 %v1955_v29 }
  0x66   :  { %1622 = vmatprep.mubr.msk.bf16.mxu0 %vm215_vm0, %v1956_v36 }
  0x6d   :  { %754 = vmatmul.mubr.bf16.gmra.mrb[16].mxu0 %v1958_v37 }
  0x6e   :  { %1623 = vmatprep.mubr.msk.bf16.mxu0 %vm215_vm0, %v1959_v44 }
  0x75   :  { %762 = vmatmul.mubr.bf16.gmra.mrb[20].mxu0 %v1961_v45 }
 0x108   :  { %v256_v62 = vpop.f32.mrb[0].mxu0 }
 0x109   :  { %v258_v0 = vpop.f32.mrb[1].mxu0  ;;  %v257_v1 = vadd.f32 %v1580_v61, %v256_v62 }
 0x10a   :  { %v259_v3 = vpop.f32.mrb[2].mxu0 }
 0x10b   :  { %v260_v4 = vadd.f32 %v1580_v61, %v259_v3  ;;  %v261_v5 = vpop.f32.mrb[3].mxu0  ;;  %v271_v7 = vmax.f32 %v257_v1, 0.0 }
 0x10d   :  { %v272_v6 = vmax.f32 %v260_v4, 0.0 }
 0x10f   :  { %v285_v8 = vsel %vm279_vm2, %v272_v6, 0.0 }
 0x110   :  { %v288_v9 = vmax.f32 %v271_v7, %v285_v8  ;;  %v264_v10 = vpop.f32.mrb[4].mxu0 }
 0x111   :  { %v266_v11 = vpop.f32.mrb[5].mxu0  ;;  %v265_v13 = vadd.f32 %v1580_v61, %v264_v10 }
 0x112   :  { %v289_v12 = vrot.slane %v288_v9, 4  ;;  %v267_v14 = vpop.f32.mrb[6].mxu0 }
 0x113   :  { %v268_v15 = vadd.f32 %v1580_v61, %v267_v14  ;;  %v269_v16 = vpop.f32.mrb[7].mxu0  ;;  %v273_v19 = vmax.f32 %v265_v13, 0.0 }
 0x114   :  { %v290_v17 = vmax.f32 %v288_v9, %v289_v12 }
 0x115   :  { %v274_v18 = vmax.f32 %v268_v15, 0.0 }
 0x116   :  { %v291_v21 = vrot.slane %v290_v17, 2 }
 0x117   :  { %v287_v20 = vsel %vm279_vm2, %v274_v18, 0.0 }
 0x118   :  { %v295_v22 = vmax.f32 %v273_v19, %v287_v20  ;;  %v292_v24 = vmax.f32 %v290_v17, %v291_v21 }
 0x11a   :  { %v296_v23 = vrot.slane %v295_v22, 4  ;;  %v293_v28 = vrot.slane %v292_v24, 1 }
 0x11c   :  { %v297_v25 = vmax.f32 %v295_v22, %v296_v23  ;;  %v294_v30 = vmax.f32 %v292_v24, %v293_v28 }
 0x11e   :  { %v298_v26 = vrot.slane %v297_v25, 2 }
 0x120   :  { %v299_v27 = vmax.f32 %v297_v25, %v298_v26 }
 0x122   :  { %v300_v29 = vrot.slane %v299_v27, 1 }
 0x124   :  { %v301_v31 = vmax.f32 %v299_v27, %v300_v29 }
 0x126   :  { %v311_v33 = vsel %vm310_vm3, %v301_v31, %v294_v30 }
 0x127   :  { %1736 = vmatmul.mubr.f32.vlgmr.msra.gmra.mrb[0].mxu1 %v311_v33  ;;  %v127_v33 = vld [vmem:[%s2542_s29] sm:$0xff] }
 0x128   :  { %1739 = vmatpush3.msra.mxu1 %v129_v32  ;;  %1740 = vmatprep.mubr.msk.f32.mxu1 %vm1968_vm1, %v1969_v58 }
 0x129   :  { %1863 = vmatprep.subr.bf16.mxu1 %v1967_v2 }
 0x130   :  { %v739_v35 = vpop.f32.mrb[8].mxu0 }
 0x131   :  { %v740_v36 = vadd.f32 %v1601_v34, %v739_v35  ;;  %v741_v37 = vpop.f32.mrb[9].mxu0 }
 0x132   :  { %v742_v38 = vpop.f32.mrb[10].mxu0  ;;  %v1864_v37 = vpack.c.bf16 %v128_v63, %v127_v33 }
 0x133   :  { %v743_v39 = vadd.f32 %v1601_v34, %v742_v38  ;;  %v744_v40 = vpop.f32.mrb[11].mxu0  ;;  %v770_v41 = vmax.f32 %v740_v36, 0.0  ;;  %v88_v36 = vld [vmem:[%s2543_s2] sm:$0x3] }
 0x134   :  { %1741 = vmatmul.mubr.msk.f32.vlgmr.msra.gmra.mrb[2].mxu1 %vm384_vm4, %v88_v36  ;;  %v1219_v36 = vld [vmem:[%s2510_s20] sm:$0xff] }
 0x135   :  { %v771_v42 = vmax.f32 %v743_v39, 0.0  ;;  %1865 = vmatpush3.bf16.msra.mxu1 %v1864_v37  ;;  %1747 = vmatprep.mubr.msk.f32.mxu1 %vm1968_vm1, %v1969_v58  ;;  %v1220_v37 = vld [vmem:[%s2510_s20 + $0x8] sm:$0x3] }
 0x136   :  { %1866 = vmatprep.subr.bf16.mxu1 %v1967_v2 }
 0x137   :  { %v779_v43 = vsel %vm279_vm2, %v771_v42, 0.0 }
 0x138   :  { %v786_v44 = vmax.f32 %v770_v41, %v779_v43  ;;  %v747_v45 = vpop.f32.mrb[12].mxu0 }
 0x139   :  { %v748_v46 = vadd.f32 %v1601_v34, %v747_v45  ;;  %v749_v47 = vpop.f32.mrb[13].mxu0  ;;  %v570_v45 = vld [vmem:[%s2503_s13] sm:$0xff] }
 0x13a   :  { %v750_v48 = vpop.f32.mrb[14].mxu0  ;;  %v787_v0 = vrot.slane %v786_v44, 4 }
 0x13b   :  { %v751_v49 = vadd.f32 %v1601_v34, %v750_v48  ;;  %v752_v50 = vpop.f32.mrb[15].mxu0  ;;  %v772_v51 = vmax.f32 %v748_v46, 0.0  ;;  %v571_v46 = vld [vmem:[%s2503_s13 + $0x8] sm:$0xff] }
 0x13c   :  { %v788_v7 = vmax.f32 %v786_v44, %v787_v0  ;;  %v1597_v44 = vld [vmem:[%s2502_s9] ss:$0 sm:$0xff]  ;;  %v1867_v50 = vpack.c.bf16 %v571_v46, %v570_v45  ;;  %v579_v0 = vld [vmem:[%s2503_s13 + $0x48] sm:$0xff] }
 0x13d   :  { %v773_v52 = vmax.f32 %v751_v49, 0.0 }
 0x13e   :  { %v789_v17 = vrot.slane %v788_v7, 2 }
 0x13f   :  { %v781_v53 = vsel %vm279_vm2, %v773_v52, 0.0  ;;  %v572_v52 = vld [vmem:[%s2503_s13 + $0x10] sm:$0xff] }
 0x140   :  { %v793_v54 = vmax.f32 %v772_v51, %v781_v53  ;;  %v755_v55 = vpop.f32.mrb[16].mxu0  ;;  %v790_v23 = vmax.f32 %v788_v7, %v789_v17  ;;  %v573_v53 = vld [vmem:[%s2503_s13 + $0x18] sm:$0xff]  ;;  %v583_v7 = vld [vmem:[%s2503_s13 + $0x68] sm:$0xff] }
 0x141   :  { %v756_v56 = vadd.f32 %v1601_v34, %v755_v55  ;;  %v757_v57 = vpop.f32.mrb[17].mxu0  ;;  %v574_v55 = vld [vmem:[%s2503_s13 + $0x20] sm:$0xff]  ;;  %v588_v17 = vld [vmem:[%s2506_s15 + $0x8] sm:$0xff] }
 0x142   :  { %v758_v59 = vpop.f32.mrb[18].mxu0  ;;  %v794_v1 = vrot.slane %v793_v54, 4  ;;  %v791_v28 = vrot.slane %v790_v23, 1 }
 0x143   :  { %v759_v60 = vadd.f32 %v1601_v34, %v758_v59  ;;  %v760_v61 = vpop.f32.mrb[19].mxu0  ;;  %v774_v62 = vmax.f32 %v756_v56, 0.0  ;;  %v575_v56 = vld [vmem:[%s2503_s13 + $0x28] sm:$0xff]  ;;  %v576_v59 = vld [vmem:[%s2503_s13 + $0x30] sm:$0xff] }
 0x144   :  { %v795_v8 = vmax.f32 %v793_v54, %v794_v1  ;;  %v1870_v54 = vpack.c.bf16 %v573_v53, %v572_v52  ;;  %v1873_v57 = vpack.c.bf16 %v575_v56, %v574_v55  ;;  %v1449_v56 = vld [vmem:[%s2513_s21] sm:$0xff] }
 0x145   :  { %v775_v3 = vmax.f32 %v759_v60, 0.0  ;;  %v577_v60 = vld [vmem:[%s2503_s13 + $0x38] sm:$0xff] }
 0x146   :  { %v796_v18 = vrot.slane %v795_v8, 2  ;;  %v1876_v61 = vpack.c.bf16 %v577_v60, %v576_v59 }
 0x147   :  { %v783_v4 = vsel %vm279_vm2, %v775_v3, 0.0  ;;  %v580_v3 = vld [vmem:[%s2503_s13 + $0x50] sm:$0xff] }
 0x148   :  { %v800_v5 = vmax.f32 %v774_v62, %v783_v4  ;;  %v763_v6 = vpop.f32.mrb[20].mxu0  ;;  %v797_v24 = vmax.f32 %v795_v8, %v796_v18  ;;  %v578_v62 = vld [vmem:[%s2503_s13 + $0x40] sm:$0xff]  ;;  %v581_v4 = vld [vmem:[%s2503_s13 + $0x58] sm:$0xff] }
 0x149   :  { %v764_v9 = vadd.f32 %v1601_v34, %v763_v6  ;;  %v765_v10 = vpop.f32.mrb[21].mxu0  ;;  %v1879_v1 = vpack.c.bf16 %v579_v0, %v578_v62  ;;  %v582_v6 = vld [vmem:[%s2503_s13 + $0x60] sm:$0xff] }
 0x14a   :  { %v801_v11 = vrot.slane %v800_v5, 4  ;;  %v766_v12 = vpop.f32.mrb[22].mxu0  ;;  %v798_v29 = vrot.slane %v797_v24, 1  ;;  %v1885_v8 = vpack.c.bf16 %v583_v7, %v582_v6  ;;  %v585_v10 = vld [vmem:[%s2503_s13 + $0x78] sm:$0xff] }
 0x14b   :  { %v767_v13 = vadd.f32 %v1601_v34, %v766_v12  ;;  %v768_v14 = vpop.f32.mrb[23].mxu0  ;;  %v776_v16 = vmax.f32 %v764_v9, 0.0  ;;  %v792_v34 = vmax.f32 %v790_v23, %v791_v28  ;;  %v584_v9 = vld [vmem:[%s2503_s13 + $0x70] sm:$0xff]  ;;  %v1058_v23 = vld [vmem:[%s2508_s18] sm:$0xff] }
 0x14c   :  { %v802_v15 = vmax.f32 %v800_v5, %v801_v11  ;;  %v799_v35 = vmax.f32 %v797_v24, %v798_v29  ;;  %v1882_v5 = vpack.c.bf16 %v581_v4, %v580_v3  ;;  %v1888_v11 = vpack.c.bf16 %v585_v10, %v584_v9  ;;  %v589_v14 = vld [vmem:[%s2504_s16] sm:$0xff]  ;;  %v1059_v24 = vld [vmem:[%s2508_s18 + $0x8] sm:$0x3] }
 0x14d   :  { %v777_v19 = vmax.f32 %v767_v13, 0.0  ;;  %v1894_v29 = vpack.c.bf16 %v1059_v24, %v1058_v23 }
 0x14e   :  { %v803_v20 = vrot.slane %v802_v15, 2  ;;  %v824_v41 = vsel %vm310_vm3, %v799_v35, %v792_v34 }
 0x14f   :  { %v785_v21 = vsel %vm279_vm2, %v777_v19, 0.0 }
 0x150   :  { %v807_v22 = vmax.f32 %v776_v16, %v785_v21  ;;  %v804_v26 = vmax.f32 %v802_v15, %v803_v20  ;;  %v548_v15 = vld [vmem:[%s2505_s3] sm:$0xf] }
 0x151   :  { %v587_v16 = vld [vmem:[%s2506_s15] sm:$0xff] }
 0x152   :  { %v808_v25 = vrot.slane %v807_v22, 4  ;;  %v805_v31 = vrot.slane %v804_v26, 1  ;;  %v1891_v18 = vpack.c.bf16 %v588_v17, %v587_v16 }
 0x154   :  { %v809_v27 = vmax.f32 %v807_v22, %v808_v25  ;;  %v806_v38 = vmax.f32 %v804_v26, %v805_v31  ;;  %v1624_v22 = vld [vmem:[%s2507_s14] ss:$0 sm:$0xff]  ;;  %v1142_v31 = vmul.f32 %v1059_v24, %v1059_v24 }
 0x155   :  { %v1600_v25 = vld [vmem:[%s2509_s12] ss:$0 sm:$0xff] }
 0x156   :  { %v810_v30 = vrot.slane %v809_v27, 2  ;;  %v826_v42 = vsel %vm825_vm5, %v806_v38, %v824_v41  ;;  %v1902_v38 = vpack.c.bf16 %v1220_v37, %v1219_v36 }
 0x158   :  { %v811_v32 = vmax.f32 %v809_v27, %v810_v30  ;;  %v1141_v30 = vmul.f32 %v1058_v23, %v1058_v23 }
 0x15a   :  { %v812_v39 = vrot.slane %v811_v32, 1  ;;  %v1898_v34 = vpack.c.bf16 %v1142_v31, %v1141_v30 }
 0x15c   :  { %v813_v40 = vmax.f32 %v811_v32, %v812_v39 }
 0x15e   :  { %v828_v43 = vsel %vm827_vm6, %v813_v40, %v826_v42  ;;  %v1060_v42 = vld [vmem:[%s2511_s19] sm:$0xff] }
 0x15f   :  { %v1371_v45 = vmul.f32 %v1060_v42, %v1060_v42 }
 0x1fa   :  { %v379_v47 = vpop.f32.mrb[0].mxu1 }
 0x1fb   :  { %v380_v48 = vadd.f32 %v1597_v44, %v379_v47  ;;  %v1737_v49 = vpop.f32.mrb[1].mxu1 }
 0x1fd   :  { %v383_v51 = vmax.f32 %v380_v48, 0.0  ;;  %v1627_v48 = vld [vmem:[%s2512_s17] ss:$0 sm:$0xff] }
 0x1ff   :  { %1748 = vmatmul.mubr.msk.f32.vlgmr.msra.gmra.mrb[4].mxu1 %vm458_vm7, %v383_v51 }
 0x200   :  { %1868 = vmatpush3.bf16.msra.mxu1 %v1867_v50  ;;  %1782 = vmatprep.mubr.msk.f32.mxu1 %vm1968_vm1, %v1969_v58 }
 0x201   :  { %1869 = vmatprep.subr.bf16.mxu1 %v1967_v2 }
 0x204   :  { %1871 = vmatpush3.bf16.msra.mxu1 %v1870_v54 }
 0x205   :  { %1872 = vmatprep.subr.bf16.mxu1 %v1967_v2 }
 0x207   :  { %v454_v12 = vpop.f32.mrb[2].mxu1 }
 0x208   :  { %1874 = vmatpush3.bf16.msra.mxu1 %v1873_v57  ;;  %v1742_v13 = vpop.f32.mrb[3].mxu1  ;;  %v1450_v57 = vld [vmem:[%s2513_s21 + $0x8] sm:$0x3] }
 0x209   :  { %1875 = vmatprep.subr.bf16.mxu1 %v1967_v2  ;;  %v1914_v60 = vpack.c.bf16 %v1450_v57, %v1449_v56 }
 0x20c   :  { %1877 = vmatpush3.bf16.msra.mxu1 %v1876_v61 }
 0x20d   :  { %1878 = vmatprep.subr.bf16.mxu1 %v1967_v2 }
 0x210   :  { %1880 = vmatpush3.bf16.msra.mxu1 %v1879_v1 }
 0x211   :  { %1881 = vmatprep.subr.bf16.mxu1 %v1967_v2 }
 0x214   :  { %1883 = vmatpush3.bf16.msra.mxu1 %v1882_v5 }
 0x215   :  { %1884 = vmatprep.subr.bf16.mxu1 %v1967_v2 }
 0x218   :  { %1886 = vmatpush3.bf16.msra.mxu1 %v1885_v8 }
 0x219   :  { %1887 = vmatprep.subr.bf16.mxu1 %v1967_v2 }
 0x21c   :  { %1889 = vmatpush3.bf16.msra.mxu1 %v1888_v11 }
 0x21d   :  { %1785 = vmatprep.subr.mxu1 %v1969_v58 }
 0x21f   :  { %1783 = vmatmul.mubr.f32.vlgmr.msra.gmra.mrb[6].mxu1 %v828_v43  ;;  %v1061_v43 = vld [vmem:[%s2511_s19 + $0x8] sm:$0x3] }
 0x220   :  { %1787 = vmatprep.mubr.msk.f32.mxu1 %vm1968_vm1, %v1969_v58  ;;  %1786 = vmatpush3.msra.mxu1 %v589_v14  ;;  %v1906_v44 = vpack.c.bf16 %v1061_v43, %v1060_v42  ;;  %v1372_v46 = vmul.f32 %v1061_v43, %v1061_v43 }
 0x221   :  { %1890 = vmatprep.subr.bf16.mxu1 %v1967_v2 }
 0x222   :  { %v1910_v47 = vpack.c.bf16 %v1372_v46, %v1371_v45 }
 0x223   :  { %1788 = vmatmul.mubr.msk.f32.vlgmr.msra.gmra.mrb[8].mxu1 %vm384_vm4, %v548_v15 }
 0x224   :  { %1794 = vmatprep.mubr.msk.f32.mxu1 %vm1968_vm1, %v1969_v58  ;;  %1892 = vmatpush3.bf16.msra.mxu1 %v1891_v18 }
 0x225   :  { %1893 = vmatprep.subr.bf16.mxu1 %v1967_v2 }
 0x2d2   :  { %v528_v19 = vpop.f32.mrb[4].mxu1 }
 0x2d3   :  { %v529_v20 = vadd.f32 %v528_v19, %v454_v12  ;;  %v1749_v21 = vpop.f32.mrb[5].mxu1 }
 0x2d5   :  { %v538_v32 = vadd.f32 %v1600_v25, %v529_v20 }
 0x2d7   :  { %v539_v35 = vmax.f32 %v538_v32, 0.0 }
 0x2d9   :  { %v1140_v39 = vmul.f32 %v539_v35, %v539_v35 }
 0x2f2   :  { %v896_v26 = vpop.f32.mrb[6].mxu1 }
 0x2f3   :  { %v897_v27 = vadd.f32 %v1624_v22, %v896_v26  ;;  %v1784_v28 = vpop.f32.mrb[7].mxu1  ;;  %v1534_v22 = vstv %s2514_s22 }
 0x2f5   :  { %v900_v33 = vmax.f32 %v897_v27, 0.0  ;;  %v1537_v27 = vstv %s2515_s23 }
 0x2f6   :  { %v970_v40 = vpop.f32.mrb[8].mxu1 }
 0x2f7   :  { %1795 = vmatmul.mubr.msk.f32.vlgmr.msra.gmra.mrb[10].mxu1 %vm458_vm7, %v900_v33  ;;  %v1789_v41 = vpop.f32.mrb[9].mxu1  ;;  %v1539_v33 = vstv %s2516_s24 }
 0x2f8   :  { %1896 = vmatpush3.bf16.msk.msra.mxu1 %vm2419_vm10, %v1894_v29  ;;  %1801 = vmatprep.mubr.msk.f32.mxu1 %vm1968_vm1, %v1969_v58 }
 0x2f9   :  { %1897 = vmatprep.subr.bf16.mxu1 %v1967_v2 }
 0x2fb   :  { %1802 = vmatmul.mubr.msk.f32.vlgmr.msra.gmra.mrb[12].mxu1 %vm1062_vm11, %v539_v35 }
 0x2fc   :  { %1900 = vmatpush3.bf16.msk.msra.mxu1 %vm2419_vm10, %v1898_v34  ;;  %1808 = vmatprep.mubr.msk.f32.mxu1 %vm1968_vm1, %v1969_v58 }
 0x2fd   :  { %1901 = vmatprep.subr.bf16.mxu1 %v1967_v2 }
 0x2ff   :  { %1809 = vmatmul.mubr.msk.f32.vlgmr.msra.gmra.mrb[14].mxu1 %vm1062_vm11, %v1140_v39 }
 0x300   :  { %1904 = vmatpush3.bf16.msk.msra.mxu1 %vm2419_vm10, %v1902_v38  ;;  %1815 = vmatprep.mubr.msk.f32.mxu1 %vm1968_vm1, %v1969_v58 }
 0x301   :  { %1905 = vmatprep.subr.bf16.mxu1 %v1967_v2 }
 0x303   :  { %1816 = vmatmul.mubr.msk.f32.vlgmr.msra.gmra.mrb[16].mxu1 %vm1062_vm11, %v539_v35 }
 0x304   :  { %1822 = vmatprep.mubr.msk.f32.mxu1 %vm1968_vm1, %v1969_v58  ;;  %1908 = vmatpush3.bf16.msk.msra.mxu1 %vm2419_vm10, %v1906_v44 }
 0x305   :  { %1909 = vmatprep.subr.bf16.mxu1 %v1967_v2 }
 0x3ca   :  { %v1043_v49 = vpop.f32.mrb[10].mxu1 }
 0x3cb   :  { %v1044_v50 = vadd.f32 %v1043_v49, %v970_v40  ;;  %v1796_v51 = vpop.f32.mrb[11].mxu1 }
 0x3cd   :  { %v1053_v52 = vadd.f32 %v1627_v48, %v1044_v50 }
 0x3ce   :  { %v1136_v53 = vpop.f32.mrb[12].mxu1 }
 0x3cf   :  { %v1054_v54 = vmax.f32 %v1053_v52, 0.0  ;;  %v1803_v55 = vpop.f32.mrb[13].mxu1 }
 0x3d1   :  { %1823 = vmatmul.mubr.msk.f32.vlgmr.msra.gmra.mrb[18].mxu1 %vm1062_vm11, %v1054_v54  ;;  %v1370_v61 = vmul.f32 %v1054_v54, %v1054_v54 }
 0x3d2   :  { %1912 = vmatpush3.bf16.msk.msra.mxu1 %vm2419_vm10, %v1910_v47  ;;  %v1215_v59 = vpop.f32.mrb[14].mxu1  ;;  %1829 = vmatprep.mubr.msk.f32.mxu1 %vm1968_vm1, %v1969_v58 }
 0x3d3   :  { %v1810_v62 = vpop.f32.mrb[15].mxu1  ;;  %1913 = vmatprep.subr.bf16.mxu1 %v1967_v2 }
 0x3d5   :  { %1830 = vmatmul.mubr.msk.f32.vlgmr.msra.gmra.mrb[20].mxu1 %vm1062_vm11, %v1370_v61 }
 0x3d6   :  { %v1290_v0 = vpop.f32.mrb[16].mxu1  ;;  %1916 = vmatpush3.bf16.msk.msra.mxu1 %vm2419_vm10, %v1914_v60  ;;  %1836 = vmatprep.mubr.msk.f32.mxu1 %vm1968_vm1, %v1969_v58 }
 0x3d7   :  { %v1817_v1 = vpop.f32.mrb[17].mxu1 }
 0x3d9   :  { %1837 = vmatmul.mubr.msk.f32.vlgmr.msra.gmra.mrb[22].mxu1 %vm1062_vm11, %v1054_v54 }
 0x4a4   :  { %v1366_v3 = vpop.f32.mrb[18].mxu1 }
 0x4a5   :  { %v1524_v4 = vadd.f32 %v1366_v3, %v1136_v53  ;;  %v1542_v5 = vrot.slane %v1366_v3, 2  ;;  %v1824_v6 = vpop.f32.mrb[19].mxu1 }
 0x4a7   :  { %v1544_v7 = vadd.f32 %v1542_v5, %v1136_v53  ;;  %v1526_v9 = vmul.f32 %v1524_v4, %v1524_v4 }
 0x4a8   :  { %v1445_v8 = vpop.f32.mrb[20].mxu1 }
 0x4a9   :  { %v1525_v2 = vadd.f32 %v1445_v8, %v1215_v59  ;;  %v1546_v10 = vrot.slane %v1445_v8, 2  ;;  %v1831_v11 = vpop.f32.mrb[21].mxu1  ;;  %v1549_v12 = vmul.f32 %v1544_v7, %v1544_v7 }
 0x4ab   :  { %v1548_v13 = vadd.f32 %v1546_v10, %v1215_v59  ;;  %v1527_v14 = vsub.f32 %v1526_v9, %v1525_v2 }
 0x4ac   :  { %v1520_v15 = vpop.f32.mrb[22].mxu1 }
 0x4ad   :  { %v1533_v16 = vadd.f32 %v1520_v15, %v1290_v0  ;;  %v1556_v58 = vrot.slane %v1520_v15, 2  ;;  %v1838_v17 = vpop.f32.mrb[23].mxu1  ;;  %v1529_v18 = vsel %vm1528_vm12, %v1527_v14, 0.0  ;;  %v1550_v19 = vsub.f32 %v1549_v12, %v1548_v13 }
 0x4ae   :  { %1530 = vadd.xlane.f32.xlu0 %v1529_v18 }
 0x4af   :  { %v1558_v20 = vadd.f32 %v1556_v58, %v1290_v0  ;;  %v1551_v21 = vsel %vm1528_vm12, %v1550_v19, 0.0  ;;  %v1535_v24 = vadd.f32 %v1534_v22, %v1533_v16 }
 0x4b1   :  { %v1559_v30 = vadd.f32 %v1558_v20, %v1534_v22 }
 0x4b2   :  { %1552 = vadd.xlane.f32.xlu0 %v1551_v21 }
 0x53b   :  { %v1531_v23 = vpop.xlane.xlu0 %1530 }
 0x53c   :  { %v1532_v25 = vmul.f32 0.5, %v1531_v23 }
 0x53e   :  { %v1536_v26 = vadd.f32 %v1535_v24, %v1532_v25 }
 0x53f   :  { %v1553_v28 = vpop.xlane.xlu0 %1552 }
 0x540   :  { %v1554_v29 = vmul.f32 0.5, %v1553_v28  ;;  %v1538_v31 = vmul.f32 %v1537_v27, %v1536_v26 }
 0x542   :  { %v1560_v32 = vadd.f32 %v1559_v30, %v1554_v29  ;;  %v1540_v34 = vadd.f32 %v1539_v33, %v1538_v31 }
 0x544   :  { %v1561_v63 = vmul.f32 %v1560_v32, %v1537_v27 }
 0x546   :  { %v1562_v35 = vadd.f32 %v1561_v63, %v1539_v33 }
 0x548   :  { %v1563_v36 = vsub.f32 %v1540_v34, %v1562_v35 }
 0x54a   :  { %v1640_v37 = vmul.f32 -1.442695, %v1563_v36 }
 0x54c   :  { %1962 = vpow2.f32 %v1640_v37 }
 0x556   :  { %v1963_v38 = vpop.eup %1962 }
 0x557   :  { %v1567_v39 = vadd.f32 1.0, %v1963_v38 }
 0x559   :  { %1964 = vrcp.f32 %v1567_v39 }
 0x563   :  { %v1965_v40 = vpop.eup %1964 }
 0x564   :  { %1572 = vperm.xlu1 %1922, %v1965_v40  }
 0x5e3   :  { %v1573_v41 = vpop.permute.xlu1 %1572 }
 0x5e4   :  { %1575 = vst [vmem:[%s2517_s25] sm:$0x3] %v1573_v41 }

</bundles_post_ra>
